<compile_context>
chip_gen: v7x
topology: tpu7x:2x2x1
jax: 0.10.0
libtpu: 0.0.40
codegen_flags: <defaults>
</compile_context>

<pallas_src>
import jax
import jax.numpy as jnp
import numpy as np
from jax.experimental import pallas as pl
from jax.experimental.pallas import tpu as pltpu


# Default tile sizes (f32): rows are sublane-aligned (multiple of 8), output
# columns are lane-dense (multiple of 128).
BLOCK_B = 256   # batch rows per grid step
BLOCK_D = 512   # output features per grid step


def _round_up(x, m):
    return ((x + m - 1) // m) * m


def lff_kernel(x_ref, w_ref, b_ref, o_ref):
    # Hot path: MXU matmul -> bias add (VPU) -> sin (EUP) -> unmasked store.
    # (The 2*pi scale is already folded into w_ref; bias broadcast happens once
    # per tile via implicit broadcasting.)
    y = jnp.dot(x_ref[...], w_ref[...], preferred_element_type=jnp.float32)
    o_ref[...] = jnp.sin(y + b_ref[...]).astype(o_ref.dtype)


def prepare_lff_params(weight_t, bias, *, block_d=BLOCK_D):
    """One-time parameter transform (call once, outside the hot loop).

    - folds the 2*pi input scale into the weight,
    - zero-pads the output feature dim up to a lane-dense multiple of 128
      (padded columns are zero, so they never contaminate real outputs).
    weight_t: (Din, Dout) = PyTorch weight transposed; bias: (1, Dout) or (Dout,).
    """
    din, dout = weight_t.shape
    td = min(block_d, _round_up(dout, 128))
    dout_p = _round_up(dout, td)
    w = weight_t.astype(jnp.float32) * (2.0 * np.pi)
    w = jnp.pad(w, ((0, 0), (0, dout_p - dout)))
    b = jnp.pad(jnp.reshape(bias, (1, dout)).astype(jnp.float32),
                ((0, 0), (0, dout_p - dout)))
    return w, b


def lff_forward(x, w_prep, b_prep, *, out_dim=None,
                block_b=BLOCK_B, block_d=BLOCK_D):
    """y = sin(2*pi*x @ W^T + b), with params from prepare_lff_params.

    x: (B, Din) f32, w_prep: (Din, Dout_p) f32, b_prep: (1, Dout_p) f32.
    Returns (B, out_dim) f32 (out_dim defaults to Dout_p).
    """
    B, din = x.shape
    din_w, dout_p = w_prep.shape
    assert din == din_w, "weight must be pre-transposed to (Din, Dout)"
    if out_dim is None:
        out_dim = dout_p

    # Tile sizes: lane-dense output columns, sublane-aligned rows.
    td = min(block_d, dout_p)
    assert dout_p % td == 0
    tb = min(block_b, _round_up(B, 8))
    b_p = _round_up(B, tb)
    if b_p != B:
        x = jnp.pad(x, ((0, b_p - B), (0, 0)))

    grid = (b_p // tb, dout_p // td)

    # Double-buffered tiles (x, w, b, out) + headroom; capped well below the
    # 64 MiB physical VMEM of v7x (also fine on v5e/v6e).
    tile_bytes = 2 * 4 * (tb * din + din * td + td + tb * td)
    vmem_limit = int(min(max(4 * tile_bytes, 16 << 20), 48 << 20))

    cost = pl.CostEstimate(
        flops=2 * b_p * din * dout_p,
        transcendentals=b_p * dout_p,
        bytes_accessed=4 * (b_p * din + din * dout_p + dout_p + b_p * dout_p),
    )

    out = pl.pallas_call(
        lff_kernel,
        out_shape=jax.ShapeDtypeStruct((b_p, dout_p), jnp.float32),
        grid_spec=pltpu.PrefetchScalarGridSpec(
            num_scalar_prefetch=0,
            grid=grid,
            in_specs=[
                pl.BlockSpec((tb, din), lambda i, j: (i, 0)),   # x tile
                pl.BlockSpec((din, td), lambda i, j: (0, j)),   # weight tile
                pl.BlockSpec((1, td), lambda i, j: (0, j)),     # bias tile
            ],
            out_specs=pl.BlockSpec((tb, td), lambda i, j: (i, j)),
        ),
        compiler_params=pltpu.CompilerParams(
            dimension_semantics=("parallel", "parallel"),
            vmem_limit_bytes=vmem_limit,
        ),
        cost_estimate=cost,
    )(x, w_prep, b_prep)

    # Slice off batch / feature padding.
    return out[:B, :out_dim]


def init_lff_params(key, input_dim, mapping_size, scale=1.0):
    """Deterministic parameter init matching LFF.__init__ semantics."""
    output_dim = mapping_size * 2
    k_w, k_b = jax.random.split(key)
    # nn.init.normal_(weight, 0, scale / input_dim); PyTorch weight is (out, in),
    # stored here transposed as (in, out).
    weight_t = (scale / input_dim) * jax.random.normal(
        k_w, (input_dim, output_dim), dtype=jnp.float32
    )
    # nn.Linear default bias init: U(-1/sqrt(in), 1/sqrt(in)).
    bound = 1.0 / np.sqrt(input_dim)
    bias = jax.random.uniform(
        k_b, (1, output_dim), minval=-bound, maxval=bound, dtype=jnp.float32
    )
    return weight_t, bias


if __name__ == "__main__":
    key = jax.random.PRNGKey(0)
    k_x, k_p = jax.random.split(key)

    batch = 8
    input_dim = 4
    mapping_size = 16   # -> output_dim = 32 (padded to 128 inside the kernel call)

    x = jax.random.normal(k_x, (batch, input_dim), dtype=jnp.float32)
    weight_t, bias = init_lff_params(k_p, input_dim, mapping_size, scale=1.0)

    out_dim = 2 * mapping_size
    w_prep, b_prep = prepare_lff_params(weight_t, bias)   # one-time transform
    out = lff_forward(x, w_prep, b_prep, out_dim=out_dim)
    out = jax.block_until_ready(out)
    assert out.shape == (batch, out_dim)

    # Check 1 (tight): same math & operands the kernel consumes
    # (2*pi algebraically folded into W; identical f32 operands -> tight match).
    ref_same = jnp.sin(x @ (weight_t * (2.0 * np.pi)) + bias)
    np.testing.assert_allclose(np.asarray(out), np.asarray(ref_same),
                               rtol=1e-5, atol=1e-5)

    # Check 2 (loose): literal PyTorch-module formula sin(Linear(2*pi*x)) in f64,
    # guards against gross errors independent of MXU matmul precision.
    ref64 = np.sin(2.0 * np.pi * np.asarray(x, np.float64)
                   @ np.asarray(weight_t, np.float64)
                   + np.asarray(bias, np.float64))
    np.testing.assert_allclose(np.asarray(out), ref64, rtol=5e-3, atol=5e-3)

    print("KERNEL_OK")
</pallas_src>

<mosaic_0001>
module attributes {stable_mosaic.version = 11 : i64} {
  func.func @lff_kernel(%arg0: i32, %arg1: i32, %arg2: memref<8x4xf32, #tpu.memory_space<vmem>>, %arg3: memref<4x128xf32, #tpu.memory_space<vmem>>, %arg4: memref<1x128xf32, #tpu.memory_space<vmem>>, %arg5: memref<8x128xf32, #tpu.memory_space<vmem>>) attributes {dimension_semantics = [#tpu.dimension_semantics<parallel>, #tpu.dimension_semantics<parallel>], iteration_bounds = array<i64: 1, 1>, scalar_prefetch = 0 : i64, scratch_operands = 0 : i64, tpu.core_type = #tpu.core_type<tc>, window_params = [{transform_indices = @transform_0, window_bounds = array<i64: 8, 4>}, {transform_indices = @transform_1, window_bounds = array<i64: 4, 128>}, {transform_indices = @transform_2, window_bounds = array<i64: 1, 128>}, {transform_indices = @transform_3, window_bounds = array<i64: 8, 128>}]} {
    %c0 = arith.constant 0 : index
    %c0_0 = arith.constant 0 : index
    %0 = vector.load %arg2[%c0, %c0_0] : memref<8x4xf32, #tpu.memory_space<vmem>>, vector<8x4xf32>
    %c0_1 = arith.constant 0 : index
    %c0_2 = arith.constant 0 : index
    %1 = vector.load %arg3[%c0_1, %c0_2] : memref<4x128xf32, #tpu.memory_space<vmem>>, vector<4x128xf32>
    %cst = arith.constant dense<0.000000e+00> : vector<8x128xf32>
    %2 = tpu.matmul %0, %1, %cst {dimension_numbers = #tpu.dot_dimension_numbers<[1], [0], [0], [1], [0, 0, 1, 1], [], []>} : vector<8x4xf32>, vector<4x128xf32>, vector<8x128xf32> -> vector<8x128xf32>
    %c0_3 = arith.constant 0 : index
    %c0_4 = arith.constant 0 : index
    %3 = vector.load %arg4[%c0_3, %c0_4] : memref<1x128xf32, #tpu.memory_space<vmem>>, vector<1x128xf32>
    %4 = vector.broadcast %3 : vector<1x128xf32> to vector<8x128xf32>
    %5 = arith.addf %2, %4 : vector<8x128xf32>
    %6 = math.sin %5 : vector<8x128xf32>
    %c0_5 = arith.constant 0 : index
    %c0_6 = arith.constant 0 : index
    %7 = vector.load %arg5[%c0_5, %c0_6] : memref<8x128xf32, #tpu.memory_space<vmem>>, vector<8x128xf32>
    tpu.vector_store %arg5[%c0_5, %c0_6], %6 {strides = array<i32>} : memref<8x128xf32, #tpu.memory_space<vmem>>, vector<8x128xf32>,
    return
  }
  func.func @transform_0(%arg0: i32, %arg1: i32) -> (i32, i32) {
    %c0_i32 = arith.constant 0 : i32
    %c0_i32_0 = arith.constant 0 : i32
    return %arg0, %c0_i32 : i32, i32
  }
  func.func @transform_1(%arg0: i32, %arg1: i32) -> (i32, i32) {
    %c0_i32 = arith.constant 0 : i32
    %c0_i32_0 = arith.constant 0 : i32
    return %c0_i32, %arg1 : i32, i32
  }
  func.func @transform_2(%arg0: i32, %arg1: i32) -> (i32, i32) {
    %c0_i32 = arith.constant 0 : i32
    %c0_i32_0 = arith.constant 0 : i32
    return %c0_i32, %arg1 : i32, i32
  }
  func.func @transform_3(%arg0: i32, %arg1: i32) -> (i32, i32) {
    %c0_i32 = arith.constant 0 : i32
    return %arg0, %arg1 : i32, i32
  }
}

</mosaic_0001>

<bundles_post_ra>
// kernel: tpu_custom_call.1
= control target key start
LH: loop header
LB: loop body
LE: loop exit
PB: predicated region body
PF: predicated region fallthrough
CT: control target
= control target key end

     0   :  { %vm28_vm0 = vcmask 1043456   ;;  %v276_v2 = vmov 0.0   ;;  %vm277_vm1 = vmmov 0   ;;  %vm24_vm2 = vcmask 31744   ;;  %s347_s0 = inlined_call_operand.vmem [shape: f32[8,4], index: 0, kind: input, shape index: {}]   ;;  %s348_s1 = inlined_call_operand.vmem [shape: f32[4,128], index: 1, kind: input, shape index: {}]   ;;  %s349_s2 = inlined_call_operand.vmem [shape: f32[1,128], index: 2, kind: input, shape index: {}]   ;;  %s350_s3 = inlined_call_operand.hbm [shape: f32[8,128], index: 3, kind: output, shape index: {}]  }
   0x1   :  { %v16_v0 = vld [vmem:[%s348_s1] sm:$0xf]  ;;  %230 = vmatprep.subr.mxu0 %v276_v2  ;;  %232 = vmatprep.mubr.msk.f32.mxu0 %vm277_vm1, %v276_v2 }
   0x2   :  { %v15_v1 = vld [vmem:[%s347_s0] sm:$0xff] }
   0x3   :  { %8 = vsyncpa [#allocation3], 0  ;;  %231 = vmatpush3.msk.msra.mxu0 %vm28_vm0, %v16_v0  ;;  %v221_v3 = vld [vmem:[%s349_s2] ss:$0 sm:$0xff]  ;;  %v278_v17 = vmov 683565275  }
   0x4   :  { %233 = vmatmul.mubr.msk.f32.vlgmr.msra.gmra.mrb[0].mxu0 %vm24_vm2, %v15_v1  ;;  %v279_v19 = vmov 2475754826   ;;  %v280_v22 = vmov 2131351028   ;;  %v281_v25 = vmov 2102212464  }
   0x5   :  { %v282_v28 = vmov 920167782   ;;  %v283_v31 = vmov 1326507024   ;;  %s284_s0 = smov [#allocation2]  }
   0x6   :  { %s213_s1 = sshll.u32 %s284_s0, 4  ;;  %s214_s1 = int_to_ptr.vmem [resolvable:$true] %s213_s1 }
   0x7   :  { %s252_s2 = scalar_lea.vmem %s214_s1, 128  ;;  %p257_p1 = scmp.lt.s32.totalorder %s214_s1, %s214_s1 }
   0x8   :  { %p253_p0 = scmp.ne.s32.totalorder %s214_s1, %s252_s2  ;;  %p258_p2 = scmp.lt.s32.totalorder %s252_s2, %s252_s2 }
   0xa   :  { %p259_p3 = por %p258_p2, %p257_p1 }
   0xc   :  { %p260_p4 = pnand %p259_p3, %p253_p0 }
  0xd7   :  { %v98_v4 = vpop.f32.mrb[0].mxu0 }
  0xd8   :  { %v314_v5 = vadd.f32 %v221_v3, %v98_v4  ;;  %v234_v6 = vpop.f32.mrb[1].mxu0 }
  0xda   :  { %v105_v7 = vand.u32 2139095040, %v314_v5  ;;  %v102_v11 = vand.u32 2147483647, %v314_v5  ;;  %vm104_vm10 = vcmp.lt.s32.totalorder %v314_v5, 0  ;;  %vm194_vm15 = vweird.f32 %v314_v5 }
  0xdc   :  { %v106_v8 = vshrl.u32 %v105_v7, 23  ;;  %v109_v14 = vand.u32 8388607, %v102_v11  ;;  %vm103_vm11 = vcmp.le.f32.partialorder %v102_v11, 0.7853982 }
  0xde   :  { %v224_v9 = vadd.s32 4294967169, %v106_v8  ;;  %v110_v33 = vor.u32 8388608, %v109_v14 }
  0xe0   :  { %v112_v10 = vadd.s32 1, %v224_v9  ;;  %v150_v47 = vshll.u32 %v110_v33, 8 }
  0xe2   :  { %vm113_vm3 = vcmp.gt.s32.totalorder %v112_v10, 0 }
  0xe3   :  { %v114_v12 = vsel %vm113_vm3, %v112_v10, 0 }
  0xe4   :  { %v116_v13 = vand.u32 31, %v114_v12  ;;  %v115_v16 = vshrl.u32 %v114_v12, 5 }
  0xe6   :  { %v117_v15 = vsub.s32 32, %v116_v13  ;;  %v119_v18 = vshll.u32 %v278_v17, %v116_v13  ;;  %v122_v20 = vshll.u32 %v279_v19, %v116_v13  ;;  %v125_v24 = vshll.u32 %v280_v22, %v116_v13 }
  0xe7   :  { %v128_v27 = vshll.u32 %v281_v25, %v116_v13  ;;  %v131_v30 = vshll.u32 %v282_v28, %v116_v13  ;;  %vm134_vm4 = vcmp.lt.s32.totalorder %v115_v16, 1  ;;  %vm137_vm5 = vcmp.lt.s32.totalorder %v115_v16, 4 }
  0xe8   :  { %v120_v21 = vshrl.u32 %v279_v19, %v117_v15  ;;  %v123_v23 = vshrl.u32 %v280_v22, %v117_v15  ;;  %v126_v26 = vshrl.u32 %v281_v25, %v117_v15  ;;  %v129_v29 = vshrl.u32 %v282_v28, %v117_v15 }
  0xe9   :  { %v132_v32 = vshrl.u32 %v283_v31, %v117_v15  ;;  %v118_v42 = vshrl.u32 %v278_v17, %v117_v15  ;;  %vm136_vm6 = vcmp.lt.s32.totalorder %v115_v16, 3  ;;  %vm135_vm7 = vcmp.lt.s32.totalorder %v115_v16, 2 }
  0xea   :  { %v121_v34 = vor.u32 %v120_v21, %v119_v18  ;;  %v124_v35 = vor.u32 %v123_v23, %v122_v20  ;;  %v127_v36 = vor.u32 %v126_v26, %v125_v24  ;;  %v130_v37 = vor.u32 %v129_v29, %v128_v27 }
  0xeb   :  { %v133_v38 = vor.u32 %v132_v32, %v131_v30 }
  0xec   :  { %v139_v39 = vsel %vm137_vm5, %v127_v36, 2102212464  ;;  %v142_v40 = vsel %vm134_vm4, %v121_v34, %v124_v35  ;;  %v146_v41 = vsel %vm134_vm4, %v124_v35, %v127_v36  ;;  %v143_v43 = vsel %vm137_vm5, %v130_v37, 920167782 }
  0xed   :  { %v147_v44 = vsel %vm137_vm5, %v133_v38, 1326507024  ;;  %v144_v45 = vsel %vm136_vm6, %v127_v36, %v143_v43  ;;  %v138_v48 = vsel %vm134_vm4, %v118_v42, %v121_v34  ;;  %v140_v49 = vsel %vm136_vm6, %v124_v35, %v139_v39 }
  0xee   :  { %v148_v46 = vsel %vm136_vm6, %v130_v37, %v147_v44  ;;  %v145_v50 = vsel %vm135_vm7, %v142_v40, %v144_v45  ;;  %v141_v56 = vsel %vm135_vm7, %v138_v48, %v140_v49 }
  0xef   :  { %v149_v51 = vsel %vm135_vm7, %v146_v41, %v148_v46  ;;  %v323_v54 = vmul.u32.u64.low %v150_v47, %v145_v50  ;;  %v324_v55 = vmul.u32.u64.high %v150_v47, %v145_v50, %v323_v54  ;;  %v157_v58 = vmul.u32 %v150_v47, %v141_v56 }
  0xf0   :  { %v320_v52 = vmul.u32.u64.low %v150_v47, %v149_v51  ;;  %v321_v53 = vmul.u32.u64.high %v150_v47, %v149_v51, %v320_v52 }
  0xf1   :  { %v160_v57 = vadd.s32 1, %v324_v55 }
  0xf2   :  { %vm159_vm8 = vc.u32 %v321_v53, %v323_v54  ;;  %v158_v7 = vadd.s32 %v323_v54, %v321_v53 }
  0xf3   :  { %v161_v59 = vsel %vm159_vm8, %v160_v57, %v324_v55 }
  0xf4   :  { %v162_v60 = vadd.s32 %v161_v59, %v157_v58 }
  0xf6   :  { %v163_v61 = vadd.s32 536870912, %v162_v60 }
  0xf8   :  { %v164_v62 = vshrl.u32 %v163_v61, 30 }
  0xfa   :  { %v165_v63 = vshll.u32 %v164_v62, 30  ;;  %v188_v20 = vsub.s32 4, %v164_v62 }
  0xfc   :  { %v166_v0 = vsub.s32 %v162_v60, %v165_v63  ;;  %v189_v23 = vsel %vm104_vm10, %v188_v20, %v164_v62 }
  0xfd   :  { %v191_v25 = vsel %vm103_vm11, 0, %v189_v23 }
  0xfe   :  { %v168_v1 = vsub.s32 0, %v166_v0  ;;  %v195_v26 = vadd.s32 3, %v191_v25 }
 0x100   :  { %v225_v2 = vmin.u32 %v168_v1, %v166_v0  ;;  %v196_v27 = vand.u32 3, %v195_v26 }
 0x102   :  { %v170_v3 = vclz %v225_v2  ;;  %vm201_vm12 = vcmp.eq.s32.totalorder %v196_v27, 2  ;;  %vm198_vm13 = vcmp.eq.s32.totalorder %v196_v27, 0  ;;  %vm197_vm14 = vcmp.lt.s32.totalorder %v196_v27, 2 }
 0x104   :  { %v226_v4 = vadd.s32 4294967294, %v170_v3 }
 0x106   :  { %vm227_vm9 = vcmp.lt.s32.totalorder %v226_v4, 0 }
 0x107   :  { %v173_v6 = vsel %vm227_vm9, 0, %v226_v4 }
 0x108   :  { %v174_v8 = vsub.s32 32, %v173_v6  ;;  %v178_v9 = vsub.s32 4294967266, %v173_v6  ;;  %v175_v10 = vshll.u32 %v166_v0, %v173_v6 }
 0x10a   :  { %v176_v12 = vshrl.u32 %v158_v7, %v174_v8  ;;  %v179_v13 = vadd.s32 127, %v178_v9 }
 0x10c   :  { %v177_v14 = vor.u32 %v176_v12, %v175_v10  ;;  %v180_v15 = vshll.u32 %v179_v13, 23 }
 0x10e   :  { %v181_v16 = vor.u32 4788187, %v180_v15  ;;  %v184_v18 = vcvt.s32.f32 %v177_v14 }
 0x110   :  { %v182_v17 = vand.u32 2147483647, %v181_v16 }
 0x112   :  { %v185_v19 = vmul.f32 %v184_v18, %v182_v17 }
 0x114   :  { %v186_v21 = vxor.u32 2147483648, %v185_v19 }
 0x116   :  { %v187_v22 = vsel %vm104_vm10, %v186_v21, %v185_v19 }
 0x117   :  { %v190_v24 = vsel %vm103_vm11, %v314_v5, %v187_v22 }
 0x118   :  { %248 = vcosq.f32 %v190_v24 }
 0x119   :  { %250 = vsinq.f32 %v190_v24 }
 0x122   :  { %v249_v28 = vpop.eup %248 }
 0x123   :  { %v251_v29 = vpop.eup %250  ;;  %v202_v30 = vxor.u32 2147483648, %v249_v28 }
 0x124   :  { %v199_v31 = vxor.u32 2147483648, %v251_v29 }
 0x125   :  { %v203_v32 = vsel %vm201_vm12, %v202_v30, %v251_v29 }
 0x126   :  { %v200_v33 = vsel %vm198_vm13, %v249_v28, %v199_v31 }
 0x127   :  { %v204_v11 = vsel %vm197_vm14, %v200_v33, %v203_v32 }
 0x128   :  { %v205_v34 = vsel %vm194_vm15, nan, %v204_v11 }
 0x129   :  { %206 = vst [vmem:[#allocation2] sm:$0xff] %v205_v34 }
 0x12a   :  { %263 = shalt.err (!%p260_p4)
}
 0x12b   :  { %s264_s20 = scalar_lea.hbm %s350_s3, 128 }
 0x12c   :  { %p265_p5 = scmp.ne.s32.totalorder %s350_s3, %s264_s20  ;;  %p268_p6 = scmp.lt.u32.totalorder %s264_s20, %s350_s3 }
 0x12e   :  { %p270_p7 = pnand %p268_p6, %p265_p5 }
 0x130   :  { %273 = shalt.err (!%p270_p7)
}
 0x131   :  { %216 = dma.vmem_to_hbm [thread:$0]  %s214_s1, 128, %s350_s3, [#allocation3]  }
 0x132   :  { %274 = dma.done.wait [#allocation3], 128  }
 0x133   :  { %275 = vsyncadd [#allocation3], 4294967168 }
 0x134   :  { %220 = vsyncpa [#allocation3], 1 }

</bundles_post_ra>
